<compile_context>
chip_gen: v7x
topology: tpu7x:2x2x1
jax: 0.10.0
libtpu: 0.0.40
codegen_flags: <defaults>
</compile_context>

<pallas_src>
import functools

import jax
import jax.numpy as jnp
from jax import lax
from jax.experimental import pallas as pl
from jax.experimental.pallas import tpu as pltpu


def _fused_mlp_kernel(*refs, act_flags, out_dims):
    """refs = (x, w_0, ..., w_{L-1}, bias_pack, out).

    w_i     : (Dout_i, Din_i) bf16, tile-aligned (lane dim = fan_in).
    bias_pack: (L, 128) f32 — bias of layer i lives in row i, lanes [0:Dout_i].
    Entire MLP is computed on-chip; only the final tile is written.
    """
    n_layers = len(act_flags)
    x_ref = refs[0]
    b_ref = refs[1 + n_layers]
    o_ref = refs[-1]

    h = x_ref[...]                                        # (B, Din) f32
    for i in range(n_layers):
        w = refs[1 + i][...]                              # (Dout_i, Din_i) bf16
        # h @ w.T on the MXU: contract last dim of BOTH operands (bf16 in,
        # f32 accumulation). Keeping w in (out, in) layout avoids padding the
        # narrow out dim (32 -> 128 lanes) on the dominant w0 HBM->VMEM DMA.
        h = lax.dot_general(
            h.astype(w.dtype), w,
            dimension_numbers=(((1,), (1,)), ((), ())),
            preferred_element_type=jnp.float32,
        )                                                 # (B, Dout_i) f32
        h = h + b_ref[i:i + 1, 0:out_dims[i]]             # f32 epilogue (VPU-safe on v5e)
        if act_flags[i]:
            h = jnp.maximum(h, 0.0)
    o_ref[...] = h.astype(o_ref.dtype)


def mlp_pallas(x2d, weights, bias_pack, act_flags, out_dims):
    """x2d: (B, Din) f32. weights: [w_i (Dout_i, Din_i) bf16]. bias_pack: (L, 128) f32."""
    B = x2d.shape[0]
    d_out_final = weights[-1].shape[0]

    flat_inputs = [x2d, *weights, bias_pack]

    flops = sum(2 * B * w.shape[0] * w.shape[1] for w in weights)
    bytes_accessed = (
        sum(int(a.size) * a.dtype.itemsize for a in flat_inputs)
        + B * d_out_final * x2d.dtype.itemsize
    )

    kernel = functools.partial(
        _fused_mlp_kernel, act_flags=tuple(act_flags), out_dims=tuple(out_dims)
    )
    vmem = pl.BlockSpec(memory_space=pltpu.MemorySpace.VMEM)

    return pl.pallas_call(
        kernel,
        out_shape=jax.ShapeDtypeStruct((B, d_out_final), x2d.dtype),
        in_specs=[vmem] * len(flat_inputs),
        out_specs=vmem,
        cost_estimate=pl.CostEstimate(
            flops=flops, transcendentals=0, bytes_accessed=bytes_accessed
        ),
    )(*flat_inputs)


def init_mlp_params(layer_sizes, key):
    """Mimics PyTorch Linear default init (uniform +/- 1/sqrt(fan_in)).

    Weights are stored bf16 in PyTorch's native (out_features, in_features)
    layout (tile-aligned on TPU); biases stay f32 and are packed into a single
    (n_layers, 128) lane-dense slab.
    """
    n_linear = len(layer_sizes) - 1
    weights, biases = [], []
    for i in range(n_linear):
        fan_in, fan_out = layer_sizes[i], layer_sizes[i + 1]
        key, kw, kb = jax.random.split(key, 3)
        bound = 1.0 / jnp.sqrt(fan_in)
        w = jax.random.uniform(kw, (fan_out, fan_in), jnp.float32, -bound, bound)
        b = jax.random.uniform(kb, (fan_out,), jnp.float32, -bound, bound)
        weights.append(w.astype(jnp.bfloat16))
        biases.append(b)

    max_out = max(layer_sizes[1:])
    lane_width = max(128, ((max_out + 127) // 128) * 128)
    bias_pack = jnp.zeros((n_linear, lane_width), jnp.float32)
    for i, b in enumerate(biases):
        bias_pack = bias_pack.at[i, : b.shape[0]].set(b)

    out_dims = tuple(layer_sizes[1:])
    return weights, bias_pack, out_dims


@functools.partial(jax.jit, static_argnames=("act_flags", "out_dims"))
def mlp_forward(x, weights, bias_pack, act_flags, out_dims):
    # nn.Flatten() branch of the PyTorch forward (ndim > 2) — plain-JAX glue.
    if x.ndim > 2:
        x = x.reshape(x.shape[0], -1)
    return mlp_pallas(x, weights, bias_pack, act_flags, out_dims)
    # BatchNorm1d / Dropout branches are disabled in this instantiation
    # (use_batch_norm=False, dropouts=0.0), so they are not emitted.


if __name__ == "__main__":
    key = jax.random.PRNGKey(0)
    kx, kp = jax.random.split(key)

    # Input consistent with the forward: NCHW, flattened to 4*16*16 = 1024 features.
    x = jax.random.normal(kx, (2, 4, 16, 16), jnp.float32)

    layer_sizes = [4 * 16 * 16, 32, 8]
    act_flags = (True, False)  # act_funcs=[nn.ReLU] -> ReLU on block 0 only
    weights, bias_pack, out_dims = init_mlp_params(layer_sizes, kp)

    out = mlp_forward(x, weights, bias_pack, act_flags, out_dims)
    jax.block_until_ready(out)

    # Sanity check against a plain-JAX reference doing the same bf16-weight math.
    ref = x.reshape(2, -1)
    for i, (w, relu) in enumerate(zip(weights, act_flags)):
        b = bias_pack[i, : out_dims[i]]
        ref = (
            jnp.dot(ref.astype(w.dtype), w.T, preferred_element_type=jnp.float32) + b
        )
        if relu:
            ref = jnp.maximum(ref, 0.0)

    assert out.shape == (2, 8)
    assert jnp.allclose(out, ref, atol=5e-3, rtol=5e-3), (
        f"max abs diff = {jnp.max(jnp.abs(out - ref))}"
    )

    print("KERNEL_OK")
</pallas_src>

<mosaic_0001>
module attributes {stable_mosaic.version = 11 : i64} {
  func.func @_fused_mlp_kernel(%arg0: memref<2x1024xf32, #tpu.memory_space<vmem>>, %arg1: memref<32x1024xbf16, #tpu.memory_space<vmem>>, %arg2: memref<8x32xbf16, #tpu.memory_space<vmem>>, %arg3: memref<2x128xf32, #tpu.memory_space<vmem>>, %arg4: memref<2x8xf32, #tpu.memory_space<vmem>>) attributes {dimension_semantics = [], scalar_prefetch = 0 : i64, scratch_operands = 0 : i64, tpu.core_type = #tpu.core_type<tc>} {
    %c0 = arith.constant 0 : index
    %c0_0 = arith.constant 0 : index
    %0 = vector.load %arg0[%c0, %c0_0] : memref<2x1024xf32, #tpu.memory_space<vmem>>, vector<2x1024xf32>
    %c0_1 = arith.constant 0 : index
    %c0_2 = arith.constant 0 : index
    %1 = vector.load %arg1[%c0_1, %c0_2] : memref<32x1024xbf16, #tpu.memory_space<vmem>>, vector<32x1024xbf16>
    %2 = arith.truncf %0 : vector<2x1024xf32> to vector<2x1024xbf16>
    %cst = arith.constant dense<0.000000e+00> : vector<2x32xf32>
    %3 = tpu.matmul %2, %1, %cst {dimension_numbers = #tpu.dot_dimension_numbers<[1], [1], [0], [0], [0, 0, 1, 0], [], []>} : vector<2x1024xbf16>, vector<32x1024xbf16>, vector<2x32xf32> -> vector<2x32xf32>
    %c0_3 = arith.constant 0 : index
    %c0_4 = arith.constant 0 : index
    %4 = vector.load %arg3[%c0_3, %c0_4] : memref<2x128xf32, #tpu.memory_space<vmem>>, vector<1x32xf32>
    %5 = vector.broadcast %4 : vector<1x32xf32> to vector<2x32xf32>
    %6 = arith.addf %3, %5 : vector<2x32xf32>
    %cst_5 = arith.constant 0.000000e+00 : f32
    %7 = vector.broadcast %cst_5 : f32 to vector<2x32xf32>
    %8 = arith.maximumf %6, %7 : vector<2x32xf32>
    %c0_6 = arith.constant 0 : index
    %c0_7 = arith.constant 0 : index
    %9 = vector.load %arg2[%c0_6, %c0_7] : memref<8x32xbf16, #tpu.memory_space<vmem>>, vector<8x32xbf16>
    %10 = arith.truncf %8 : vector<2x32xf32> to vector<2x32xbf16>
    %cst_8 = arith.constant dense<0.000000e+00> : vector<2x8xf32>
    %11 = tpu.matmul %10, %9, %cst_8 {dimension_numbers = #tpu.dot_dimension_numbers<[1], [1], [0], [0], [0, 0, 1, 0], [], []>} : vector<2x32xbf16>, vector<8x32xbf16>, vector<2x8xf32> -> vector<2x8xf32>
    %c1 = arith.constant 1 : index
    %c0_9 = arith.constant 0 : index
    %12 = vector.load %arg3[%c1, %c0_9] : memref<2x128xf32, #tpu.memory_space<vmem>>, vector<1x8xf32>
    %13 = vector.broadcast %12 : vector<1x8xf32> to vector<2x8xf32>
    %14 = arith.addf %11, %13 : vector<2x8xf32>
    %c0_10 = arith.constant 0 : index
    %c0_11 = arith.constant 0 : index
    %15 = vector.load %arg4[%c0_10, %c0_11] : memref<2x8xf32, #tpu.memory_space<vmem>>, vector<2x8xf32>
    tpu.vector_store %arg4[%c0_10, %c0_11], %14 {strides = array<i32>} : memref<2x8xf32, #tpu.memory_space<vmem>>, vector<2x8xf32>,
    return
  }
}

</mosaic_0001>

<bundles_post_ra>
// kernel: mlp_forward.1
= control target key start
LH: loop header
LB: loop body
LE: loop exit
PB: predicated region body
PF: predicated region fallthrough
CT: control target
= control target key end

     0   :  { %v43_v3 = vlaneseq  ;;  %v472_v9 = vmov 1983009808   ;;  %s578_s0 = inlined_call_operand.vmem [shape: f32[2,1024], index: 0, kind: input, shape index: {}]   ;;  %s579_s1 = inlined_call_operand.vmem [shape: bf16[32,1024], index: 1, kind: input, shape index: {}]   ;;  %s580_s2 = inlined_call_operand.vmem [shape: bf16[8,32], index: 2, kind: input, shape index: {}]   ;;  %s581_s3 = inlined_call_operand.vmem [shape: f32[2,128], index: 3, kind: input, shape index: {}]   ;;  %s582_s4 = inlined_call_operand.hbm [shape: f32[2,8], index: 4, kind: output, shape index: {}]  }
   0x1   :  { %v21_v0 = vld [vmem:[%s579_s1] sm:$0xff]  ;;  %v23_v2 = vld [vmem:[%s579_s1 + $0x10] sm:$0xff]  ;;  %v41_v10 = vunpack.c.l.s4 %v472_v9  ;;  %v20_v20 = vld [vmem:[%s578_s0 + $0x8] sm:$0xff] }
   0x2   :  { %v25_v1 = vld [vmem:[%s579_s1 + $0x20] sm:$0xff]  ;;  %v27_v5 = vld [vmem:[%s579_s1 + $0x30] sm:$0xff]  ;;  %v44_v18 = vshrl.u32 %v43_v3, 7  ;;  %v22_v23 = vld [vmem:[%s579_s1 + $0x8] sm:$0xff] }
   0x3   :  { %v407_v4 = vcombine.high %v21_v0, %v25_v1  ;;  %v406_v6 = vcombine.low %v21_v0, %v25_v1  ;;  %v29_v7 = vld [vmem:[%s579_s1 + $0x40] sm:$0xff]  ;;  %v411_v11 = vcombine.high %v23_v2, %v27_v5  ;;  %v410_v12 = vcombine.low %v23_v2, %v27_v5  ;;  %v31_v14 = vld [vmem:[%s579_s1 + $0x50] sm:$0xff]  ;;  %v26_v24 = vld [vmem:[%s579_s1 + $0x28] sm:$0xff] }
   0x4   :  { %v33_v8 = vld [vmem:[%s579_s1 + $0x60] sm:$0xff]  ;;  %v35_v15 = vld [vmem:[%s579_s1 + $0x70] sm:$0xff]  ;;  %v42_v17 = vunpack.c.0.s8 %v41_v10 }
   0x5   :  { %v415_v13 = vcombine.high %v29_v7, %v33_v8  ;;  %174 = vmatprep.subr.bf16.mxu1 %v407_v4  ;;  %v419_v16 = vcombine.high %v31_v14, %v35_v15  ;;  %254 = vmatprep.subr.bf16.mxu0 %v411_v11  ;;  %v19_v19 = vld [vmem:[%s578_s0] sm:$0xff] }
   0x6   :  { %175 = vmatpush1.bf16.xpose.msra.mxu1 %v406_v6  ;;  %255 = vmatpush1.bf16.xpose.msra.mxu0 %v410_v12  ;;  %v39_v21 = vcombine.high %v19_v19, %v19_v19  ;;  %v45_v22 = vsub.s32 %v42_v17, %v44_v18 }
   0x7   :  { %176 = vmatprep.subr.bf16.mxu1 %v415_v13  ;;  %256 = vmatprep.subr.bf16.mxu0 %v419_v16 }
   0x8   :  { %9 = vsyncpa [#allocation3], 0  ;;  %v56_v25 = vcombine.high %v20_v20, %v20_v20  ;;  %v414_v26 = vcombine.low %v29_v7, %v33_v8  ;;  %v46_v27 = vrot.slane %v19_v19, %v45_v22  ;;  %v63_v28 = vrot.slane %v20_v20, %v45_v22  ;;  %v24_v29 = vld [vmem:[%s579_s1 + $0x18] sm:$0xff]  ;;  %v30_v40 = vld [vmem:[%s579_s1 + $0x48] sm:$0xff]  ;;  %s475_s28 = smov [#allocation2]  }
   0x9   :  { %v28_v30 = vld [vmem:[%s579_s1 + $0x38] sm:$0xff]  ;;  %v418_v31 = vcombine.low %v31_v14, %v35_v15  ;;  %v409_v32 = vcombine.high %v22_v23, %v26_v24  ;;  %v53_v35 = vrot.slane %v39_v21, %v45_v22  ;;  %v34_v41 = vld [vmem:[%s579_s1 + $0x68] sm:$0xff]  ;;  %v408_v47 = vcombine.low %v22_v23, %v26_v24  ;;  %v335_v58 = vld [vmem:[%s580_s2] sm:$0xf]  ;;  %s397_s29 = sshll.u32 %s475_s28, 4  ;;  %s398_s29 = int_to_ptr.vmem [resolvable:$true] %s397_s29 }
   0xa   :  { %v54_v33 = vcombine.high %v46_v27, %v46_v27  ;;  %v71_v34 = vcombine.high %v63_v28, %v63_v28  ;;  %v413_v36 = vcombine.high %v24_v29, %v28_v30  ;;  %v70_v37 = vrot.slane %v56_v25, %v45_v22  ;;  %v32_v44 = vld [vmem:[%s579_s1 + $0x58] sm:$0xff]  ;;  %v405_v61 = vld [vmem:[%s581_s3] ss:$0 sm:$0xff]  ;;  %v422_v10 = vld [vmem:[%s581_s3 + $0x1] ss:$0 sm:$0xff]  ;;  %s448_s30 = scalar_lea.vmem %s398_s29, 32  ;;  %p453_p1 = scmp.lt.s32.totalorder %s398_s29, %s398_s29 }
   0xb   :  { %v55_v42 = vcombine.high %v53_v35, %v53_v35  ;;  %v81_v43 = vpack.c.bf16 %v46_v27, %v46_v27  ;;  %v36_v45 = vld [vmem:[%s579_s1 + $0x78] sm:$0xff]  ;;  %v85_v48 = vpack.c.bf16 %v63_v28, %v63_v28  ;;  %v412_v49 = vcombine.low %v24_v29, %v28_v30  ;;  %p449_p0 = scmp.ne.s32.totalorder %s398_s29, %s448_s30  ;;  %p454_p2 = scmp.lt.s32.totalorder %s448_s30, %s448_s30 }
   0xc   :  { %v82_v38 = vpack.c.bf16 %v54_v33, %v54_v33  ;;  %v86_v39 = vpack.c.bf16 %v71_v34, %v71_v34  ;;  %v72_v46 = vcombine.high %v70_v37, %v70_v37  ;;  %v417_v50 = vcombine.high %v30_v40, %v34_v41 }
   0xd   :  { %v421_v51 = vcombine.high %v32_v44, %v36_v45  ;;  %v84_v52 = vpack.c.bf16 %v55_v42, %v55_v42  ;;  %v416_v54 = vcombine.low %v30_v40, %v34_v41  ;;  %v420_v55 = vcombine.low %v32_v44, %v36_v45  ;;  %p455_p3 = por %p454_p2, %p453_p1 }
   0xe   :  { %177 = vmatpush1.bf16.xpose.msra.mxu1 %v414_v26  ;;  %257 = vmatpush1.bf16.xpose.msra.mxu0 %v418_v31  ;;  %v88_v53 = vpack.c.bf16 %v72_v46, %v72_v46  ;;  %v83_v56 = vpack.c.bf16 %v53_v35, %v53_v35  ;;  %v87_v57 = vpack.c.bf16 %v70_v37, %v70_v37  ;;  %vm342_vm0 = vcmask 261120  }
   0xf   :  { %214 = vmatprep.subr.bf16.mxu1 %v409_v32  ;;  %206 = vmatprep.mubr.bf16.mxu1 %v82_v38  ;;  %v473_v59 = vmov 0.0   ;;  %v347_v60 = vsel %vm342_vm0, %v335_v58, 0  ;;  %vm474_vm1 = vmmov 0   ;;  %vm389_vm2 = vcmask 58368   ;;  %p456_p4 = pnand %p455_p3, %p449_p0 }
  0x10   :  { %286 = vmatprep.mubr.bf16.mxu0 %v86_v39  ;;  %294 = vmatprep.subr.bf16.mxu0 %v413_v36 }
  0x15   :  { %207 = vmatmul.mubr.bf16.vlgmr.msra.gmra.mrb[0].mxu1 %v81_v43  ;;  %287 = vmatmul.mubr.bf16.vlgmr.msra.gmra.mrb[0].mxu0 %v85_v48 }
  0x16   :  { %215 = vmatpush1.bf16.xpose.msra.mxu1 %v408_v47  ;;  %295 = vmatpush1.bf16.xpose.msra.mxu0 %v412_v49 }
  0x17   :  { %216 = vmatprep.subr.bf16.mxu1 %v417_v50  ;;  %296 = vmatprep.subr.bf16.mxu0 %v421_v51 }
  0x18   :  { %246 = vmatprep.mubr.bf16.mxu1 %v84_v52  ;;  %326 = vmatprep.mubr.bf16.mxu0 %v88_v53 }
  0x1e   :  { %217 = vmatpush1.bf16.xpose.msra.mxu1 %v416_v54  ;;  %297 = vmatpush1.bf16.xpose.msra.mxu0 %v420_v55 }
  0x1f   :  { %426 = vmatprep.subr.bf16.mxu1 %v473_v59 }
  0x25   :  { %247 = vmatmul.mubr.bf16.vlgmr.msra.gmra.mrb[0].mxu1 %v83_v56  ;;  %327 = vmatmul.mubr.bf16.vlgmr.msra.gmra.mrb[0].mxu0 %v87_v57 }
  0x26   :  { %427 = vmatpush3.bf16.xpose.msra.mxu1 %v347_v60  ;;  %428 = vmatprep.mubr.msk.bf16.mxu1 %vm474_vm1, %v473_v59 }
  0xf8   :  { %v248_v62 = vpop.f32.mrb[0].mxu1  ;;  %v328_v0 = vpop.f32.mrb[0].mxu0 }
  0xf9   :  { %v432_v63 = vadd.f32 %v405_v61, %v248_v62  ;;  %v250_v1 = vpop.f32.mrb[1].mxu1  ;;  %v330_v2 = vpop.f32.mrb[1].mxu0 }
  0xfa   :  { %v251_v3 = vpop.f32.mrb[2].mxu1  ;;  %v331_v5 = vpop.f32.mrb[2].mxu0 }
  0xfb   :  { %v433_v4 = vadd.f32 %v432_v63, %v328_v0  ;;  %v252_v6 = vpop.f32.mrb[3].mxu1  ;;  %v332_v7 = vpop.f32.mrb[3].mxu0 }
  0xfd   :  { %v334_v8 = vmax.f32 %v433_v4, 0.0 }
  0xff   :  { %v336_v9 = vpack.c.bf16 %v334_v8, %v334_v8 }
 0x101   :  { %429 = vmatmul.mubr.msk.bf16.vlgmr.msra.gmra.mrb[4].mxu1 %vm342_vm0, %v336_v9 }
 0x1d4   :  { %v383_v11 = vpop.f32.mrb[4].mxu1 }
 0x1d5   :  { %v384_v12 = vadd.f32 %v422_v10, %v383_v11  ;;  %v430_v13 = vpop.f32.mrb[5].mxu1 }
 0x1d6   :  { %v386_v14 = vpop.f32.mrb[6].mxu1 }
 0x1d7   :  { %v431_v15 = vpop.f32.mrb[7].mxu1  ;;  %390 = vst.msk [vmem:[#allocation2] sm:$0x3] %vm389_vm2, %v384_v12 }
 0x1d8   :  { %459 = shalt.err (!%p456_p4)
}
 0x1d9   :  { %s460_s3 = scalar_lea.hbm %s582_s4, 32 }
 0x1da   :  { %p461_p5 = scmp.ne.s32.totalorder %s582_s4, %s460_s3  ;;  %p464_p6 = scmp.lt.u32.totalorder %s460_s3, %s582_s4 }
 0x1dc   :  { %p466_p7 = pnand %p464_p6, %p461_p5 }
 0x1de   :  { %469 = shalt.err (!%p466_p7)
}
 0x1df   :  { %400 = dma.vmem_to_hbm [thread:$0]  %s398_s29, 32, %s582_s4, [#allocation3]  }
 0x1e0   :  { %470 = dma.done.wait [#allocation3], 32  }
 0x1e1   :  { %471 = vsyncadd [#allocation3], 4294967264 }
 0x1e2   :  { %404 = vsyncpa [#allocation3], 1 }

</bundles_post_ra>
